<compile_context>
chip_gen: v7x
topology: tpu7x:2x2x1
jax: 0.10.0
libtpu: 0.0.40
codegen_flags: <defaults>
</compile_context>

<pallas_src>
import functools

import jax
import jax.numpy as jnp
from jax.experimental import pallas as pl
from jax.experimental.pallas import tpu as pltpu


def _round_up(x: int, m: int) -> int:
    return (x + m - 1) // m * m


def _vmem_budget_bytes() -> int:
    """Per-TensorCore scoped-VMEM budget, generation-aware with safe fallback."""
    try:
        cap = int(pltpu.get_tpu_info().vmem_capacity_bytes)
    except Exception:
        cap = 64 * 1024 * 1024  # v7x per-TC size: safe lower bound everywhere
    # Leave ~25% headroom for compiler-internal scratch; cap at 96 MiB.
    return int(min(cap * 3 // 4, 96 * 1024 * 1024))


def _plan_groups(dims_p, cbytes, vmem_limit):
    """Greedily pack consecutive layers so each group's (single-buffered)
    resident weights use at most ~half the VMEM budget (rest is for tiles)."""
    budget = max(vmem_limit // 2, 8 * 1024 * 1024)
    n_layers = len(dims_p) - 1
    groups, lo, acc = [], 0, 0
    for l in range(n_layers):
        wb = dims_p[l] * dims_p[l + 1] * cbytes + dims_p[l + 1] * 4
        if l > lo and acc + wb > budget:
            groups.append((lo, l))
            lo, acc = l, 0
        acc += wb
    groups.append((lo, n_layers))
    # TODO(synk): a single layer whose weight alone exceeds the VMEM budget
    # would need an extra N/K tiling grid axis; not implemented here.
    return tuple(groups)


def _mlp_group_kernel(x_ref, *refs, n_layers: int, relu_last: bool, out_cols: int):
    """Fused body for one group of layers.

    refs = (w0, b0, ..., w_{n-1}, b_{n-1}, o_ref).  The activation stays in
    VMEM/vregs between layers; only the group's output is written back.
    """
    o_ref = refs[-1]
    x = x_ref[...]                                   # (tm, K0p), compute dtype
    for l in range(n_layers):
        w = refs[2 * l][...]                         # (Kp, Np), compute dtype
        b = refs[2 * l + 1][...]                     # (1, Np),  float32
        y = jnp.dot(x, w, preferred_element_type=jnp.float32) + b
        if l < n_layers - 1 or relu_last:
            x = jnp.maximum(y, 0.0).astype(x_ref.dtype)
        else:
            x = y                                     # last layer: no ReLU, f32
    if out_cols == x.shape[1]:
        o_ref[...] = x.astype(o_ref.dtype)
    else:
        o_ref[...] = x[:, :out_cols].astype(o_ref.dtype)


def _fused_group(x, group_ops, *, dims_p_group, relu_last, out_cols, out_dtype,
                 tm_target, vmem_limit):
    """Run one group of layers as a single pallas_call over the M axis."""
    M = x.shape[0]
    n_l = len(dims_p_group) - 1
    cbytes = x.dtype.itemsize
    obytes = jnp.dtype(out_dtype).itemsize

    weight_bytes = sum(
        dims_p_group[l] * dims_p_group[l + 1] * cbytes + dims_p_group[l + 1] * 4
        for l in range(n_l))

    # --- Size the M tile from the VMEM budget:
    #   x tile (double-buffered) + out tile (double-buffered; VMEM lane
    #   footprint is >= 128 wide) + headroom for live f32 intermediates.
    out_lanes = max(_round_up(out_cols, 128), 128)
    per_row = (2 * dims_p_group[0] * cbytes
               + 2 * out_lanes * obytes
               + 3 * max(dims_p_group) * 4)
    align_m = 16 if cbytes == 2 else 8
    avail = max(vmem_limit - weight_bytes - (2 << 20), 0)
    tm = max(align_m, min(tm_target, (avail // per_row) // align_m * align_m))
    tm = int(min(tm, _round_up(M, align_m)))
    # Ensure >=2 grid steps when possible so the "parallel" axis can shard
    # across both TensorCores on megacore parts (v7x).
    if pl.cdiv(M, tm) == 1 and M > align_m:
        tm_half = _round_up(-(-M // 2), align_m)
        if tm_half < M:
            tm = tm_half
    grid = (pl.cdiv(M, tm),)

    in_specs = [pl.BlockSpec((tm, dims_p_group[0]), lambda i: (i, 0))]
    for l in range(n_l):
        kp, np_ = dims_p_group[l], dims_p_group[l + 1]
        # Constant index map -> weights/biases stay VMEM-resident; single
        # buffer (no useless double-buffering of constant blocks).
        in_specs.append(pl.BlockSpec((kp, np_), lambda i: (0, 0),
                                     pipeline_mode=pl.Buffered(1)))
        in_specs.append(pl.BlockSpec((1, np_), lambda i: (0, 0),
                                     pipeline_mode=pl.Buffered(1)))
    out_spec = pl.BlockSpec((tm, out_cols), lambda i: (i, 0))

    flops = sum(2 * M * dims_p_group[l] * dims_p_group[l + 1] for l in range(n_l))
    bytes_accessed = (M * dims_p_group[0] * cbytes + weight_bytes
                      + M * out_cols * obytes)

    return pl.pallas_call(
        functools.partial(_mlp_group_kernel, n_layers=n_l,
                          relu_last=relu_last, out_cols=out_cols),
        out_shape=jax.ShapeDtypeStruct((M, out_cols), out_dtype),
        grid_spec=pltpu.PrefetchScalarGridSpec(
            num_scalar_prefetch=0,
            grid=grid,
            in_specs=in_specs,
            out_specs=out_spec,
        ),
        compiler_params=pltpu.CompilerParams(
            dimension_semantics=("parallel",),
            vmem_limit_bytes=int(vmem_limit),
        ),
        cost_estimate=pl.CostEstimate(
            flops=int(flops), transcendentals=0,
            bytes_accessed=int(bytes_accessed)),
    )(x, *group_ops)


def _mlp_forward(x2d, ops, *, groups, dims, dims_p, compute_dtype, out_dtype,
                 tm_target, vmem_limit):
    """Forward over a flattened (M, input_dim) activation slab."""
    k0 = dims[0]
    x = x2d.astype(compute_dtype)
    # Lane pad of the input feature dim only (skipped when already aligned).
    # Required for exactness: undefined pad lanes could be NaN (NaN*0 = NaN).
    if dims_p[0] != k0:
        x = jnp.pad(x, ((0, 0), (0, dims_p[0] - k0)))

    n_groups = len(groups)
    for gi, (lo, hi) in enumerate(groups):
        last = gi == n_groups - 1
        x = _fused_group(
            x, ops[2 * lo: 2 * hi],
            dims_p_group=tuple(dims_p[lo: hi + 1]),
            relu_last=not last,
            out_cols=(dims[-1] if last else dims_p[hi]),
            out_dtype=(out_dtype if last else compute_dtype),
            tm_target=tm_target,
            vmem_limit=vmem_limit)
    return x


class MLPPallas:
    """JAX/Pallas port of the PyTorch MLP module (fused forward kernel)."""

    def __init__(self, input_dim, hidden_dim, output_dim, num_layers, key,
                 compute_dtype=jnp.bfloat16, tm_target=512):
        self.num_layers = num_layers
        self.compute_dtype = compute_dtype

        dims = [input_dim] + [hidden_dim] * (num_layers - 1) + [output_dim]
        dims_p = [_round_up(d, 128) for d in dims]
        self._dims, self._dims_p = dims, dims_p

        # --- PyTorch nn.Linear default init, stored transposed (in, out).
        self.weights = []   # float32 (in_features, out_features)
        self.biases = []    # float32 (out_features,)
        for n, k in zip(dims[:-1], dims[1:]):
            key, kw, kb = jax.random.split(key, 3)
            bound = 1.0 / (float(n) ** 0.5)
            w_pt = jax.random.uniform(kw, (k, n), jnp.float32, -bound, bound)
            b_pt = jax.random.uniform(kb, (k,), jnp.float32, -bound, bound)
            self.weights.append(w_pt.T)
            self.biases.append(b_pt)

        # --- Pad + cast ONCE and cache (zero pads are numerically exact).
        ops = []
        for l in range(num_layers):
            kp, np_ = dims_p[l], dims_p[l + 1]
            w = jnp.zeros((kp, np_), compute_dtype)
            w = w.at[:dims[l], :dims[l + 1]].set(
                self.weights[l].astype(compute_dtype))
            b = jnp.zeros((1, np_), jnp.float32)
            b = b.at[0, :dims[l + 1]].set(self.biases[l].astype(jnp.float32))
            ops += [w, b]
        self._ops = tuple(ops)

        cbytes = jnp.dtype(compute_dtype).itemsize
        self._vmem_limit = _vmem_budget_bytes()
        self._groups = _plan_groups(dims_p, cbytes, self._vmem_limit)

        self._forward = jax.jit(functools.partial(
            _mlp_forward,
            groups=self._groups,
            dims=tuple(dims),
            dims_p=tuple(dims_p),
            compute_dtype=compute_dtype,
            out_dtype=jnp.float32,
            tm_target=tm_target,
            vmem_limit=self._vmem_limit))

    def __call__(self, x):
        lead = x.shape[:-1]
        x2d = x.reshape(-1, x.shape[-1])
        y2d = self._forward(x2d, self._ops)
        return y2d.reshape(*lead, y2d.shape[-1])


def _reference(x, weights, biases, num_layers, compute_dtype=jnp.float32):
    """Pure-JAX reference; compute_dtype mimics the kernel operand precision."""
    x2d = x.reshape(-1, x.shape[-1]).astype(compute_dtype)
    for i, (w, b) in enumerate(zip(weights, biases)):
        y = jnp.dot(x2d, w.astype(compute_dtype),
                    preferred_element_type=jnp.float32) + b.astype(jnp.float32)
        if i < num_layers - 1:
            x2d = jnp.maximum(y, 0.0).astype(compute_dtype)
        else:
            x2d = y
    return x2d.reshape(*x.shape[:-1], x2d.shape[-1])


if __name__ == "__main__":
    key = jax.random.PRNGKey(0)
    key, kx, kp, kx2 = jax.random.split(key, 4)

    batch, seq = 2, 8
    input_dim, hidden_dim, output_dim, num_layers = 16, 32, 8, 3

    x = jax.random.normal(kx, (batch, seq, input_dim), jnp.float32)
    mlp = MLPPallas(input_dim, hidden_dim, output_dim, num_layers, kp)

    out = jax.block_until_ready(mlp(x))
    assert out.shape == (batch, seq, output_dim), out.shape

    # Reference at matched operand precision (bf16 operands, f32 accumulate).
    ref_bf16 = _reference(x, mlp.weights, mlp.biases, num_layers, jnp.bfloat16)
    assert jnp.allclose(out, ref_bf16, atol=2e-3, rtol=2e-3), (
        "mismatch vs matched-precision reference: max abs diff = "
        f"{float(jnp.max(jnp.abs(out - ref_bf16)))}")

    # Full-f32 PyTorch semantics: agrees up to bf16 operand rounding.
    ref_f32 = _reference(x, mlp.weights, mlp.biases, num_layers, jnp.float32)
    assert jnp.allclose(out, ref_f32, atol=1.5e-1, rtol=5e-2), (
        "mismatch vs f32 reference: max abs diff = "
        f"{float(jnp.max(jnp.abs(out - ref_f32)))}")

    # Second shape with a ragged M (not a tile multiple): exercises the
    # no-M-pad path and a >=2-step parallel grid.
    x2 = jax.random.normal(kx2, (3, 37, input_dim), jnp.float32)
    out2 = jax.block_until_ready(mlp(x2))
    assert out2.shape == (3, 37, output_dim), out2.shape
    ref2 = _reference(x2, mlp.weights, mlp.biases, num_layers, jnp.bfloat16)
    assert jnp.allclose(out2, ref2, atol=2e-3, rtol=2e-3), (
        "ragged-M mismatch: max abs diff = "
        f"{float(jnp.max(jnp.abs(out2 - ref2)))}")

    print("KERNEL_OK")
</pallas_src>

<mosaic_0001>
module attributes {stable_mosaic.version = 11 : i64} {
  func.func @_mlp_group_kernel(%arg0: i32, %arg1: memref<16x128xbf16, #tpu.memory_space<vmem>>, %arg2: memref<128x128xbf16, #tpu.memory_space<vmem>>, %arg3: memref<1x128xf32, #tpu.memory_space<vmem>>, %arg4: memref<128x128xbf16, #tpu.memory_space<vmem>>, %arg5: memref<1x128xf32, #tpu.memory_space<vmem>>, %arg6: memref<128x128xbf16, #tpu.memory_space<vmem>>, %arg7: memref<1x128xf32, #tpu.memory_space<vmem>>, %arg8: memref<16x8xf32, #tpu.memory_space<vmem>>) attributes {dimension_semantics = [#tpu.dimension_semantics<parallel>], iteration_bounds = array<i64: 1>, scalar_prefetch = 0 : i64, scratch_operands = 0 : i64, tpu.core_type = #tpu.core_type<tc>, window_params = [{transform_indices = @transform_0, window_bounds = array<i64: 16, 128>}, {pipeline_mode = #tpu.pipeline_mode<synchronous>, transform_indices = @transform_1, window_bounds = array<i64: 128, 128>}, {pipeline_mode = #tpu.pipeline_mode<synchronous>, transform_indices = @transform_2, window_bounds = array<i64: 1, 128>}, {pipeline_mode = #tpu.pipeline_mode<synchronous>, transform_indices = @transform_3, window_bounds = array<i64: 128, 128>}, {pipeline_mode = #tpu.pipeline_mode<synchronous>, transform_indices = @transform_4, window_bounds = array<i64: 1, 128>}, {pipeline_mode = #tpu.pipeline_mode<synchronous>, transform_indices = @transform_5, window_bounds = array<i64: 128, 128>}, {pipeline_mode = #tpu.pipeline_mode<synchronous>, transform_indices = @transform_6, window_bounds = array<i64: 1, 128>}, {transform_indices = @transform_7, window_bounds = array<i64: 16, 8>}]} {
    %c0 = arith.constant 0 : index
    %c0_0 = arith.constant 0 : index
    %0 = vector.load %arg1[%c0, %c0_0] : memref<16x128xbf16, #tpu.memory_space<vmem>>, vector<16x128xbf16>
    %c0_1 = arith.constant 0 : index
    %c0_2 = arith.constant 0 : index
    %1 = vector.load %arg2[%c0_1, %c0_2] : memref<128x128xbf16, #tpu.memory_space<vmem>>, vector<128x128xbf16>
    %c0_3 = arith.constant 0 : index
    %c0_4 = arith.constant 0 : index
    %2 = vector.load %arg3[%c0_3, %c0_4] : memref<1x128xf32, #tpu.memory_space<vmem>>, vector<1x128xf32>
    %cst = arith.constant dense<0.000000e+00> : vector<16x128xf32>
    %3 = tpu.matmul %0, %1, %cst {dimension_numbers = #tpu.dot_dimension_numbers<[1], [0], [0], [1], [0, 0, 1, 1], [], []>} : vector<16x128xbf16>, vector<128x128xbf16>, vector<16x128xf32> -> vector<16x128xf32>
    %4 = vector.broadcast %2 : vector<1x128xf32> to vector<16x128xf32>
    %5 = arith.addf %3, %4 : vector<16x128xf32>
    %cst_5 = arith.constant 0.000000e+00 : f32
    %6 = vector.broadcast %cst_5 : f32 to vector<16x128xf32>
    %7 = arith.maximumf %5, %6 : vector<16x128xf32>
    %8 = arith.truncf %7 : vector<16x128xf32> to vector<16x128xbf16>
    %c0_6 = arith.constant 0 : index
    %c0_7 = arith.constant 0 : index
    %9 = vector.load %arg4[%c0_6, %c0_7] : memref<128x128xbf16, #tpu.memory_space<vmem>>, vector<128x128xbf16>
    %c0_8 = arith.constant 0 : index
    %c0_9 = arith.constant 0 : index
    %10 = vector.load %arg5[%c0_8, %c0_9] : memref<1x128xf32, #tpu.memory_space<vmem>>, vector<1x128xf32>
    %cst_10 = arith.constant dense<0.000000e+00> : vector<16x128xf32>
    %11 = tpu.matmul %8, %9, %cst_10 {dimension_numbers = #tpu.dot_dimension_numbers<[1], [0], [0], [1], [0, 0, 1, 1], [], []>} : vector<16x128xbf16>, vector<128x128xbf16>, vector<16x128xf32> -> vector<16x128xf32>
    %12 = vector.broadcast %10 : vector<1x128xf32> to vector<16x128xf32>
    %13 = arith.addf %11, %12 : vector<16x128xf32>
    %cst_11 = arith.constant 0.000000e+00 : f32
    %14 = vector.broadcast %cst_11 : f32 to vector<16x128xf32>
    %15 = arith.maximumf %13, %14 : vector<16x128xf32>
    %16 = arith.truncf %15 : vector<16x128xf32> to vector<16x128xbf16>
    %c0_12 = arith.constant 0 : index
    %c0_13 = arith.constant 0 : index
    %17 = vector.load %arg6[%c0_12, %c0_13] : memref<128x128xbf16, #tpu.memory_space<vmem>>, vector<128x128xbf16>
    %c0_14 = arith.constant 0 : index
    %c0_15 = arith.constant 0 : index
    %18 = vector.load %arg7[%c0_14, %c0_15] : memref<1x128xf32, #tpu.memory_space<vmem>>, vector<1x128xf32>
    %cst_16 = arith.constant dense<0.000000e+00> : vector<16x128xf32>
    %19 = tpu.matmul %16, %17, %cst_16 {dimension_numbers = #tpu.dot_dimension_numbers<[1], [0], [0], [1], [0, 0, 1, 1], [], []>} : vector<16x128xbf16>, vector<128x128xbf16>, vector<16x128xf32> -> vector<16x128xf32>
    %20 = vector.broadcast %18 : vector<1x128xf32> to vector<16x128xf32>
    %21 = arith.addf %19, %20 : vector<16x128xf32>
    %22 = vector.extract_strided_slice %21 {offsets = [0, 0], sizes = [16, 8], strides = [1, 1]} : vector<16x128xf32> to vector<16x8xf32>
    %c0_17 = arith.constant 0 : index
    %c0_18 = arith.constant 0 : index
    %23 = vector.load %arg8[%c0_17, %c0_18] : memref<16x8xf32, #tpu.memory_space<vmem>>, vector<16x8xf32>
    tpu.vector_store %arg8[%c0_17, %c0_18], %22 {strides = array<i32>} : memref<16x8xf32, #tpu.memory_space<vmem>>, vector<16x8xf32>,
    return
  }
  func.func @transform_0(%arg0: i32) -> (i32, i32) {
    %c0_i32 = arith.constant 0 : i32
    %c0_i32_0 = arith.constant 0 : i32
    return %arg0, %c0_i32 : i32, i32
  }
  func.func @transform_1(%arg0: i32) -> (i32, i32) {
    %c0_i32 = arith.constant 0 : i32
    %c0_i32_0 = arith.constant 0 : i32
    %c0_i32_1 = arith.constant 0 : i32
    return %c0_i32, %c0_i32_0 : i32, i32
  }
  func.func @transform_2(%arg0: i32) -> (i32, i32) {
    %c0_i32 = arith.constant 0 : i32
    %c0_i32_0 = arith.constant 0 : i32
    %c0_i32_1 = arith.constant 0 : i32
    return %c0_i32, %c0_i32_0 : i32, i32
  }
  func.func @transform_3(%arg0: i32) -> (i32, i32) {
    %c0_i32 = arith.constant 0 : i32
    %c0_i32_0 = arith.constant 0 : i32
    %c0_i32_1 = arith.constant 0 : i32
    return %c0_i32, %c0_i32_0 : i32, i32
  }
  func.func @transform_4(%arg0: i32) -> (i32, i32) {
    %c0_i32 = arith.constant 0 : i32
    %c0_i32_0 = arith.constant 0 : i32
    %c0_i32_1 = arith.constant 0 : i32
    return %c0_i32, %c0_i32_0 : i32, i32
  }
  func.func @transform_5(%arg0: i32) -> (i32, i32) {
    %c0_i32 = arith.constant 0 : i32
    %c0_i32_0 = arith.constant 0 : i32
    %c0_i32_1 = arith.constant 0 : i32
    return %c0_i32, %c0_i32_0 : i32, i32
  }
  func.func @transform_6(%arg0: i32) -> (i32, i32) {
    %c0_i32 = arith.constant 0 : i32
    %c0_i32_0 = arith.constant 0 : i32
    %c0_i32_1 = arith.constant 0 : i32
    return %c0_i32, %c0_i32_0 : i32, i32
  }
  func.func @transform_7(%arg0: i32) -> (i32, i32) {
    %c0_i32 = arith.constant 0 : i32
    %c0_i32_0 = arith.constant 0 : i32
    return %arg0, %c0_i32 : i32, i32
  }
}

</mosaic_0001>

<bundles_post_ra>
// kernel: _mlp_forward.1
= control target key start
LH: loop header
LB: loop body
LE: loop exit
PB: predicated region body
PF: predicated region fallthrough
CT: control target
= control target key end

     0   :  { %12 = vsyncpa [#allocation3], 0  ;;  %s791_s0 = inlined_call_operand.vmem [shape: bf16[16,128], index: 0, kind: input, shape index: {}]   ;;  %s792_s1 = inlined_call_operand.hbm [shape: bf16[128,128], index: 1, kind: input, shape index: {}]   ;;  %s793_s2 = inlined_call_operand.vmem [shape: f32[1,128], index: 2, kind: input, shape index: {}]   ;;  %s794_s3 = inlined_call_operand.hbm [shape: bf16[128,128], index: 3, kind: input, shape index: {}]   ;;  %s795_s4 = inlined_call_operand.vmem [shape: f32[1,128], index: 4, kind: input, shape index: {}]   ;;  %s796_s5 = inlined_call_operand.hbm [shape: bf16[128,128], index: 5, kind: input, shape index: {}]   ;;  %s797_s6 = inlined_call_operand.vmem [shape: f32[1,128], index: 6, kind: input, shape index: {}]   ;;  %s798_s7 = inlined_call_operand.vmem [shape: f32[16,8], index: 7, kind: output, shape index: {}]  }
   0x1   :  { %13 = vsyncpa [#allocation5], 0  ;;  %s644_s24 = smov [#allocation4]   ;;  %s645_s26 = smov [#allocation2]  }
   0x2   :  { %s35_s25 = sshll.u32 %s644_s24, 4  ;;  %s21_s27 = sshll.u32 %s645_s26, 4  ;;  %s36_s25 = int_to_ptr.vmem [resolvable:$true] %s35_s25  ;;  %s691_s27 = int_to_ptr.vmem [resolvable:$true] %s21_s27 }
   0x3   :  { %s574_s30 = scalar_lea.hbm %s794_s3, 1024 }
   0x4   :  { %p575_p0 = scmp.ne.s32.totalorder %s794_s3, %s574_s30  ;;  %p578_p1 = scmp.lt.u32.totalorder %s574_s30, %s794_s3 }
   0x6   :  { %p580_p2 = pnand %p578_p1, %p575_p0 }
   0x8   :  { %583 = shalt.err (!%p580_p2)
}
   0x9   :  { %s584_s12 = scalar_lea.vmem %s36_s25, 1024  ;;  %p589_p4 = scmp.lt.s32.totalorder %s36_s25, %s36_s25 }
   0xa   :  { %p585_p3 = scmp.ne.s32.totalorder %s36_s25, %s584_s12  ;;  %p590_p5 = scmp.lt.s32.totalorder %s584_s12, %s584_s12 }
   0xc   :  { %p591_p6 = por %p590_p5, %p589_p4 }
   0xe   :  { %p592_p7 = pnand %p591_p6, %p585_p3 }
  0x10   :  { %595 = shalt.err (!%p592_p7)
}
  0x11   :  { %s646_s13 = smov 64   ;;  %s647_s14 = smov 4  }
  0x12   :  { %41 = dma.hbm_to_vmem [thread:$0]  %s794_s3, 1024, %s36_s25, [#allocation5], %s646_s13, %s646_s13, %s647_s14  }
  0x13   :  { %s596_s19 = scalar_lea.hbm %s792_s1, 1024 }
  0x14   :  { %p597_p8 = scmp.ne.s32.totalorder %s792_s1, %s596_s19  ;;  %p600_p9 = scmp.lt.u32.totalorder %s596_s19, %s792_s1 }
  0x16   :  { %p602_p10 = pnand %p600_p9, %p597_p8 }
  0x18   :  { %605 = shalt.err (!%p602_p10)
}
  0x19   :  { %s606_s24 = scalar_lea.vmem %s691_s27, 1024  ;;  %p611_p12 = scmp.lt.s32.totalorder %s691_s27, %s691_s27 }
  0x1a   :  { %p607_p11 = scmp.ne.s32.totalorder %s691_s27, %s606_s24  ;;  %p612_p13 = scmp.lt.s32.totalorder %s606_s24, %s606_s24 }
  0x1c   :  { %p613_p0 = por %p612_p13, %p611_p12 }
  0x1e   :  { %p614_p1 = pnand %p613_p0, %p607_p11 }
  0x20   :  { %617 = shalt.err (!%p614_p1)
}
  0x21   :  { %27 = dma.hbm_to_vmem [thread:$0]  %s792_s1, 1024, %s691_s27, [#allocation3], %s646_s13, %s646_s13, %s647_s14  }
  0x22   :  { %s648_s26 = smov [#allocation6]   ;;  %s618_s8 = scalar_lea.hbm %s796_s5, 1024 }
  0x23   :  { %s49_s28 = sshll.u32 %s648_s26, 4  ;;  %p619_p2 = scmp.ne.s32.totalorder %s796_s5, %s618_s8  ;;  %s50_s28 = int_to_ptr.vmem [resolvable:$true] %s49_s28 }
  0x24   :  { %p622_p3 = scmp.lt.u32.totalorder %s618_s8, %s796_s5 }
  0x26   :  { %p624_p4 = pnand %p622_p3, %p619_p2 }
  0x28   :  { %627 = shalt.err (!%p624_p4)
}
  0x29   :  { %s628_s15 = scalar_lea.vmem %s50_s28, 1024  ;;  %p633_p6 = scmp.lt.s32.totalorder %s50_s28, %s50_s28 }
  0x2a   :  { %p629_p5 = scmp.ne.s32.totalorder %s50_s28, %s628_s15  ;;  %p634_p7 = scmp.lt.s32.totalorder %s628_s15, %s628_s15 }
  0x2c   :  { %p635_p8 = por %p634_p7, %p633_p6 }
  0x2e   :  { %p636_p9 = pnand %p635_p8, %p629_p5 }
  0x30   :  { %639 = shalt.err (!%p636_p9)
}
  0x31   :  { %55 = dma.hbm_to_vmem [thread:$0]  %s796_s5, 1024, %s50_s28, [#allocation5], %s646_s13, %s646_s13, %s647_s14  }
  0x32   :  { %640 = dma.done.wait [#allocation3], 1024  }
  0x33   :  { %641 = vsyncadd [#allocation3], 4294966272 }
  0x34   :  { %642 = dma.done.wait [#allocation5], 2048  }
  0x35   :  { %643 = vsyncadd [#allocation5], 4294965248  ;;  %v649_v0 = vmov 0.0   ;;  %vm650_vm0 = vmmov 0   ;;  %v549_v1 = vld [vmem:[#allocation2] sm:$0xff]   ;;  %v550_v2 = vld [vmem:[#allocation2 + $0x8] sm:$0xff]  }
  0x36   :  { %482 = vmatprep.subr.bf16.mxu0 %v649_v0  ;;  %498 = vmatprep.mubr.msk.bf16.mxu0 %vm650_vm0, %v649_v0  ;;  %v551_v3 = vld [vmem:[#allocation2 + $0x10] sm:$0xff]   ;;  %v558_v4 = vld [vmem:[#allocation4] sm:$0xff]   ;;  %v552_v5 = vld [vmem:[#allocation2 + $0x18] sm:$0xff]   ;;  %vm418_vm1 = vcmask 64512  }
  0x37   :  { %502 = vmatprep.subr.bf16.mxu1 %v649_v0  ;;  %518 = vmatprep.mubr.msk.bf16.mxu1 %vm650_vm0, %v649_v0  ;;  %v559_v6 = vld [vmem:[#allocation4 + $0x8] sm:$0xff]   ;;  %v553_v7 = vld [vmem:[#allocation2 + $0x20] sm:$0xff]   ;;  %v560_v8 = vld [vmem:[#allocation4 + $0x10] sm:$0xff]  }
  0x38   :  { %483 = vmatpush3.bf16.msra.mxu0 %v549_v1  ;;  %503 = vmatpush3.bf16.msra.mxu1 %v558_v4  ;;  %v554_v9 = vld [vmem:[#allocation2 + $0x28] sm:$0xff]   ;;  %v561_v10 = vld [vmem:[#allocation4 + $0x18] sm:$0xff]   ;;  %v555_v11 = vld [vmem:[#allocation2 + $0x30] sm:$0xff]  }
  0x39   :  { %484 = vmatprep.subr.bf16.mxu0 %v649_v0  ;;  %504 = vmatprep.subr.bf16.mxu1 %v649_v0  ;;  %v562_v12 = vld [vmem:[#allocation4 + $0x20] sm:$0xff]   ;;  %v556_v13 = vld [vmem:[#allocation2 + $0x38] sm:$0xff]   ;;  %v563_v14 = vld [vmem:[#allocation4 + $0x28] sm:$0xff]  }
  0x3a   :  { %v557_v15 = vld [vmem:[%s791_s0] sm:$0xff]   ;;  %v564_v16 = vld [vmem:[#allocation4 + $0x30] sm:$0xff]   ;;  %v565_v17 = vld [vmem:[#allocation4 + $0x38] sm:$0xff]  }
  0x3b   :  { %v566_v18 = vld [vmem:[#allocation6] sm:$0xff]   ;;  %v567_v19 = vld [vmem:[#allocation6 + $0x8] sm:$0xff]   ;;  %v568_v20 = vld [vmem:[#allocation6 + $0x10] sm:$0xff]  }
  0x3c   :  { %485 = vmatpush3.bf16.msra.mxu0 %v550_v2  ;;  %505 = vmatpush3.bf16.msra.mxu1 %v559_v6  ;;  %v569_v21 = vld [vmem:[#allocation6 + $0x18] sm:$0xff]   ;;  %v570_v22 = vld [vmem:[#allocation6 + $0x20] sm:$0xff]   ;;  %v571_v23 = vld [vmem:[#allocation6 + $0x28] sm:$0xff]  }
  0x3d   :  { %486 = vmatprep.subr.bf16.mxu0 %v649_v0  ;;  %506 = vmatprep.subr.bf16.mxu1 %v649_v0  ;;  %v427_v24 = vld [vmem:[%s793_s2] ss:$0 sm:$0xff]  ;;  %v572_v34 = vld [vmem:[#allocation6 + $0x30] sm:$0xff]   ;;  %v573_v35 = vld [vmem:[#allocation6 + $0x38] sm:$0xff]  }
  0x3e   :  { %v437_v36 = vld [vmem:[%s795_s4] ss:$0 sm:$0xff] }
  0x3f   :  { %v446_v46 = vld [vmem:[%s797_s6] ss:$0 sm:$0xff] }
  0x40   :  { %487 = vmatpush3.bf16.msra.mxu0 %v551_v3  ;;  %507 = vmatpush3.bf16.msra.mxu1 %v560_v8 }
  0x41   :  { %488 = vmatprep.subr.bf16.mxu0 %v649_v0  ;;  %508 = vmatprep.subr.bf16.mxu1 %v649_v0 }
  0x44   :  { %489 = vmatpush3.bf16.msra.mxu0 %v552_v5  ;;  %509 = vmatpush3.bf16.msra.mxu1 %v561_v10 }
  0x45   :  { %490 = vmatprep.subr.bf16.mxu0 %v649_v0  ;;  %510 = vmatprep.subr.bf16.mxu1 %v649_v0 }
  0x48   :  { %491 = vmatpush3.bf16.msra.mxu0 %v553_v7  ;;  %511 = vmatpush3.bf16.msra.mxu1 %v562_v12 }
  0x49   :  { %492 = vmatprep.subr.bf16.mxu0 %v649_v0  ;;  %512 = vmatprep.subr.bf16.mxu1 %v649_v0 }
  0x4c   :  { %493 = vmatpush3.bf16.msra.mxu0 %v554_v9  ;;  %513 = vmatpush3.bf16.msra.mxu1 %v563_v14 }
  0x4d   :  { %494 = vmatprep.subr.bf16.mxu0 %v649_v0  ;;  %514 = vmatprep.subr.bf16.mxu1 %v649_v0 }
  0x50   :  { %495 = vmatpush3.bf16.msra.mxu0 %v555_v11  ;;  %515 = vmatpush3.bf16.msra.mxu1 %v564_v16 }
  0x51   :  { %496 = vmatprep.subr.bf16.mxu0 %v649_v0  ;;  %516 = vmatprep.subr.bf16.mxu1 %v649_v0 }
  0x54   :  { %497 = vmatpush3.bf16.msra.mxu0 %v556_v13  ;;  %517 = vmatpush3.bf16.msra.mxu1 %v565_v17 }
  0x55   :  { %522 = vmatprep.subr.bf16.mxu0 %v649_v0 }
  0x57   :  { %499 = vmatmul.mubr.bf16.vlgmr.msra.gmra.mrb[0].mxu0 %v557_v15 }
  0x58   :  { %538 = vmatprep.mubr.msk.bf16.mxu0 %vm650_vm0, %v649_v0  ;;  %523 = vmatpush3.bf16.msra.mxu0 %v566_v18 }
  0x59   :  { %524 = vmatprep.subr.bf16.mxu0 %v649_v0 }
  0x5c   :  { %525 = vmatpush3.bf16.msra.mxu0 %v567_v19 }
  0x5d   :  { %526 = vmatprep.subr.bf16.mxu0 %v649_v0 }
  0x60   :  { %527 = vmatpush3.bf16.msra.mxu0 %v568_v20 }
  0x61   :  { %528 = vmatprep.subr.bf16.mxu0 %v649_v0 }
  0x64   :  { %529 = vmatpush3.bf16.msra.mxu0 %v569_v21 }
  0x65   :  { %530 = vmatprep.subr.bf16.mxu0 %v649_v0 }
  0x68   :  { %531 = vmatpush3.bf16.msra.mxu0 %v570_v22 }
  0x69   :  { %532 = vmatprep.subr.bf16.mxu0 %v649_v0 }
  0x6c   :  { %533 = vmatpush3.bf16.msra.mxu0 %v571_v23 }
  0x6d   :  { %534 = vmatprep.subr.bf16.mxu0 %v649_v0 }
  0x70   :  { %535 = vmatpush3.bf16.msra.mxu0 %v572_v34 }
  0x71   :  { %536 = vmatprep.subr.bf16.mxu0 %v649_v0 }
  0x74   :  { %537 = vmatpush3.bf16.msra.mxu0 %v573_v35 }
 0x12a   :  { %v181_v25 = vpop.f32.mrb[0].mxu0 }
 0x12b   :  { %v182_v26 = vadd.f32 %v427_v24, %v181_v25  ;;  %v500_v27 = vpop.f32.mrb[1].mxu0 }
 0x12c   :  { %v184_v28 = vpop.f32.mrb[2].mxu0 }
 0x12d   :  { %v185_v29 = vadd.f32 %v427_v24, %v184_v28  ;;  %v501_v30 = vpop.f32.mrb[3].mxu0  ;;  %v188_v31 = vmax.f32 %v182_v26, 0.0 }
 0x12f   :  { %v189_v32 = vmax.f32 %v185_v29, 0.0 }
 0x131   :  { %v190_v33 = vpack.c.bf16 %v189_v32, %v188_v31 }
 0x133   :  { %519 = vmatmul.mubr.bf16.vlgmr.msra.gmra.mrb[0].mxu1 %v190_v33 }
 0x206   :  { %v296_v37 = vpop.f32.mrb[0].mxu1 }
 0x207   :  { %v297_v38 = vadd.f32 %v437_v36, %v296_v37  ;;  %v520_v39 = vpop.f32.mrb[1].mxu1 }
 0x208   :  { %v299_v40 = vpop.f32.mrb[2].mxu1 }
 0x209   :  { %v300_v41 = vadd.f32 %v437_v36, %v299_v40  ;;  %v521_v42 = vpop.f32.mrb[3].mxu1  ;;  %v303_v43 = vmax.f32 %v297_v38, 0.0 }
 0x20b   :  { %v304_v44 = vmax.f32 %v300_v41, 0.0 }
 0x20d   :  { %v305_v45 = vpack.c.bf16 %v304_v44, %v303_v43 }
 0x20f   :  { %539 = vmatmul.mubr.bf16.vlgmr.msra.gmra.mrb[4].mxu0 %v305_v45 }
 0x2e2   :  { %v411_v47 = vpop.f32.mrb[4].mxu0 }
 0x2e3   :  { %v412_v48 = vadd.f32 %v446_v46, %v411_v47  ;;  %v540_v49 = vpop.f32.mrb[5].mxu0 }
 0x2e4   :  { %v414_v50 = vpop.f32.mrb[6].mxu0 }
 0x2e5   :  { %419 = vst.msk [vmem:[%s798_s7] sm:$0xff] %vm418_vm1, %v412_v48  ;;  %v415_v51 = vadd.f32 %v446_v46, %v414_v50  ;;  %v541_v52 = vpop.f32.mrb[7].mxu0 }
 0x2e7   :  { %420 = vst.msk [vmem:[%s798_s7 + $0x8] sm:$0xff] %vm418_vm1, %v415_v51 }
 0x2e8   :  { %425 = vsyncpa [#allocation3], 1 }
 0x2e9   :  { %426 = vsyncpa [#allocation5], 1 }

</bundles_post_ra>
